<compile_context>
chip_gen: v6e
topology: v6e:2x2x1
jax: 0.10.0
libtpu: 0.0.40
codegen_flags: <defaults>
</compile_context>

<pallas_src>
from functools import partial

import numpy as np
import jax
import jax.numpy as jnp
from jax import lax
from jax.experimental import pallas as pl
from jax.experimental.pallas import tpu as pltpu


# ----------------------------------------------------------------------------
# Kernels
# ----------------------------------------------------------------------------
def _softmax_lastdim(x, inv_temp):
    l = x * inv_temp
    m = jnp.max(l, axis=-1, keepdims=True)
    e = jnp.exp(l - m)
    return e * pl.reciprocal(jnp.sum(e, axis=-1, keepdims=True), approx=True)


def generator_pointer_kernel(x_ref, attn_ref, idx_ref,
                             wproj_ref, bproj_ref, wpg_ref, bpg_ref,
                             o_ref, *, inv_temp):
    """Pointer-generator path for one (Bt, T, .) batch block."""
    f32 = jnp.float32
    x = x_ref[...].astype(f32)                            # (Bt, T, D)
    Bt, T, D = x.shape
    V = wproj_ref.shape[1]
    S = attn_ref.shape[2]

    # Fold batch+time so the projection is a single MXU-shaped matmul.
    xf = x.reshape(Bt * T, D)                             # (Bt*T, D)
    logit = jnp.dot(xf, wproj_ref[...],
                    preferred_element_type=f32) + bproj_ref[...]      # (Bt*T, V)
    pz = jnp.dot(xf, wpg_ref[...],
                 preferred_element_type=f32) + bpg_ref[...]           # (Bt*T, 1)
    alpha = 1.0 / (1.0 + jnp.exp(-pz))                    # sigmoid, (Bt*T, 1)

    vocab_dist = _softmax_lastdim(logit, inv_temp)        # (Bt*T, V)
    vocab_part = (alpha * vocab_dist).reshape(Bt, T, V)

    attn = _softmax_lastdim(attn_ref[...].astype(f32), inv_temp)      # (Bt, T, S)
    attn = (1.0 - alpha).reshape(Bt, T, 1) * attn

    # scatter_add along the vocab axis as a one-hot matmul (MXU, exact for dups).
    idx = idx_ref[...]                                    # (Bt, S, 1) int32
    onehot = (lax.broadcasted_iota(jnp.int32, (Bt, S, V), 2) == idx).astype(f32)
    copied = jnp.einsum("bts,bsv->btv", attn, onehot,
                        preferred_element_type=f32)       # (Bt, T, V)

    o_ref[...] = (vocab_part + copied).astype(o_ref.dtype)


def generator_softmax_kernel(x_ref, wproj_ref, bproj_ref, o_ref):
    """Non-pointer path: plain Linear + softmax."""
    f32 = jnp.float32
    x = x_ref[...].astype(f32)                            # (Bt, T, D)
    Bt, T, D = x.shape
    V = wproj_ref.shape[1]
    xf = x.reshape(Bt * T, D)
    logit = jnp.dot(xf, wproj_ref[...],
                    preferred_element_type=f32) + bproj_ref[...]
    m = jnp.max(logit, axis=-1, keepdims=True)
    e = jnp.exp(logit - m)
    sm = e * pl.reciprocal(jnp.sum(e, axis=-1, keepdims=True), approx=True)
    o_ref[...] = sm.reshape(Bt, T, V).astype(o_ref.dtype)


# ----------------------------------------------------------------------------
# Wrapper
# ----------------------------------------------------------------------------
def generator_forward(x, params, *, attn_dist=None, enc_batch_extend_vocab=None,
                      extra_zeros=None, temp=1.0, beam_search=False,
                      pointer_gen=True, block_b=None):
    """Pallas port of Generator.forward (config.pointer_gen -> `pointer_gen` flag)."""
    del extra_zeros  # accepted by the PyTorch forward but unused by it
    B, T, D = x.shape
    V = params["w_proj"].shape[0]

    if block_b is None:
        # Fold batch so each grid step's matmul has ~256 M-rows, while keeping
        # block_b a divisor of B (avoids boundary blocks).
        target = max(1, 256 // T)
        block_b = 1
        for cand in range(1, B + 1):
            if B % cand == 0 and cand <= target:
                block_b = cand
    grid = (B // block_b,)

    wproj_t = params["w_proj"].T.astype(jnp.float32)       # (D, V)
    bproj = params["b_proj"].reshape(1, V).astype(jnp.float32)

    x_spec = pl.BlockSpec((block_b, T, D), lambda i: (i, 0, 0))
    out_spec = pl.BlockSpec((block_b, T, V), lambda i: (i, 0, 0))

    def full_spec(a):
        nd = a.ndim
        return pl.BlockSpec(a.shape, lambda i, _nd=nd: (0,) * _nd)

    cparams = pltpu.CompilerParams(dimension_semantics=("parallel",))

    if not pointer_gen:
        return pl.pallas_call(
            generator_softmax_kernel,
            out_shape=jax.ShapeDtypeStruct((B, T, V), jnp.float32),
            grid=grid,
            in_specs=[x_spec, full_spec(wproj_t), full_spec(bproj)],
            out_specs=out_spec,
            compiler_params=cparams,
        )(x, wproj_t, bproj)

    S = attn_dist.shape[-1]
    idx = enc_batch_extend_vocab.astype(jnp.int32)          # (B, S)
    if beam_search:
        # torch: cat([enc_batch_extend_vocab_[0]] * B, 0) -> batch-0 indices everywhere
        idx = jnp.broadcast_to(idx[0:1], (B, S))
    idx = idx.reshape(B, S, 1)

    wpg_t = params["w_pg"].T.astype(jnp.float32)             # (D, 1)
    bpg = params["b_pg"].reshape(1, 1).astype(jnp.float32)

    kernel = partial(generator_pointer_kernel, inv_temp=float(1.0 / temp))

    return pl.pallas_call(
        kernel,
        out_shape=jax.ShapeDtypeStruct((B, T, V), jnp.float32),
        grid=grid,
        in_specs=[
            x_spec,
            pl.BlockSpec((block_b, T, S), lambda i: (i, 0, 0)),   # attn_dist
            pl.BlockSpec((block_b, S, 1), lambda i: (i, 0, 0)),   # extend-vocab ids
            full_spec(wproj_t),
            full_spec(bproj),
            full_spec(wpg_t),
            full_spec(bpg),
        ],
        out_specs=out_spec,
        compiler_params=cparams,
    )(x, attn_dist.astype(jnp.float32), idx, wproj_t, bproj, wpg_t, bpg)


# ----------------------------------------------------------------------------
# Pure-JAX reference (independent: uses a true scatter-add)
# ----------------------------------------------------------------------------
def generator_reference(x, params, *, attn_dist=None, enc_batch_extend_vocab=None,
                        temp=1.0, beam_search=False, pointer_gen=True):
    hp = jax.lax.Precision.HIGHEST
    logit = jnp.einsum("btd,vd->btv", x, params["w_proj"], precision=hp) + params["b_proj"]
    if not pointer_gen:
        return jax.nn.softmax(logit, axis=-1)

    p_gen = jnp.einsum("btd,od->bto", x, params["w_pg"], precision=hp) + params["b_pg"]
    alpha = jax.nn.sigmoid(p_gen)                         # (B, T, 1)
    vocab_dist = jax.nn.softmax(logit / temp, axis=2)
    vocab_dist_ = alpha * vocab_dist
    attn = jax.nn.softmax(attn_dist / temp, axis=-1)
    attn_ = (1.0 - alpha) * attn

    B, T, V = vocab_dist.shape
    S = attn_.shape[-1]
    idx = enc_batch_extend_vocab
    if beam_search:
        idx = jnp.broadcast_to(idx[0:1], idx.shape)
    idx_bts = jnp.broadcast_to(idx[:, None, :], (B, T, S))
    b_ix = jnp.arange(B)[:, None, None]
    t_ix = jnp.arange(T)[None, :, None]
    return vocab_dist_.at[b_ix, t_ix, idx_bts].add(attn_)


# ----------------------------------------------------------------------------
# Demo / self-check
# ----------------------------------------------------------------------------
if __name__ == "__main__":
    B, T = 2, 8            # batch, decoder steps
    D = 32                 # d_model == config.hidden_dim
    V = 256                # vocab size (multiple of 128 -> lane-dense output)
    S = 16                 # encoder (source) length

    key = jax.random.PRNGKey(0)
    kx, ka, ki, kp = jax.random.split(key, 4)
    x = jax.random.normal(kx, (B, T, D), jnp.float32)
    attn_scores = jax.random.normal(ka, (B, T, S), jnp.float32)
    enc_batch_extend_vocab = jax.random.randint(ki, (B, S), 0, V, jnp.int32)

    kw = jax.random.split(kp, 4)
    params = dict(
        w_proj=0.1 * jax.random.normal(kw[0], (V, D), jnp.float32),   # nn.Linear(d_model, vocab)
        b_proj=0.1 * jax.random.normal(kw[1], (V,), jnp.float32),
        w_pg=0.1 * jax.random.normal(kw[2], (1, D), jnp.float32),     # nn.Linear(hidden_dim, 1)
        b_pg=0.1 * jax.random.normal(kw[3], (1,), jnp.float32),
    )

    # pointer_gen = True path (the main one)
    out_pg = generator_forward(x, params, attn_dist=attn_scores,
                               enc_batch_extend_vocab=enc_batch_extend_vocab,
                               temp=1.0, pointer_gen=True)
    out_pg = jax.block_until_ready(out_pg)
    ref_pg = generator_reference(x, params, attn_dist=attn_scores,
                                 enc_batch_extend_vocab=enc_batch_extend_vocab,
                                 temp=1.0, pointer_gen=True)
    np.testing.assert_allclose(np.asarray(out_pg), np.asarray(ref_pg),
                               rtol=1e-2, atol=1e-3)

    # pointer_gen = False path (plain linear + softmax)
    out_sm = generator_forward(x, params, pointer_gen=False)
    out_sm = jax.block_until_ready(out_sm)
    ref_sm = generator_reference(x, params, pointer_gen=False)
    np.testing.assert_allclose(np.asarray(out_sm), np.asarray(ref_sm),
                               rtol=1e-2, atol=1e-3)

    print("KERNEL_OK")
</pallas_src>

<mosaic_0001>
module attributes {stable_mosaic.version = 11 : i64} {
  func.func @generator_pointer_kernel(%arg0: i32, %arg1: memref<2x8x32xf32, #tpu.memory_space<vmem>>, %arg2: memref<2x8x16xf32, #tpu.memory_space<vmem>>, %arg3: memref<2x16x1xi32, #tpu.memory_space<vmem>>, %arg4: memref<32x256xf32, #tpu.memory_space<vmem>>, %arg5: memref<1x256xf32, #tpu.memory_space<vmem>>, %arg6: memref<32x1xf32, #tpu.memory_space<vmem>>, %arg7: memref<1x1xf32, #tpu.memory_space<vmem>>, %arg8: memref<2x8x256xf32, #tpu.memory_space<vmem>>) attributes {dimension_semantics = [#tpu.dimension_semantics<parallel>], iteration_bounds = array<i64: 1>, scalar_prefetch = 0 : i64, scratch_operands = 0 : i64, tpu.core_type = #tpu.core_type<tc>, window_params = [{transform_indices = @transform_0, window_bounds = array<i64: 2, 8, 32>}, {transform_indices = @transform_1, window_bounds = array<i64: 2, 8, 16>}, {transform_indices = @transform_2, window_bounds = array<i64: 2, 16, 1>}, {pipeline_mode = #tpu.pipeline_mode<synchronous>, transform_indices = @transform_3, window_bounds = array<i64: 32, 256>}, {pipeline_mode = #tpu.pipeline_mode<synchronous>, transform_indices = @transform_4, window_bounds = array<i64: 1, 256>}, {pipeline_mode = #tpu.pipeline_mode<synchronous>, transform_indices = @transform_5, window_bounds = array<i64: 32, 1>}, {pipeline_mode = #tpu.pipeline_mode<synchronous>, transform_indices = @transform_6, window_bounds = array<i64: 1, 1>}, {transform_indices = @transform_7, window_bounds = array<i64: 2, 8, 256>}]} {
    %c0 = arith.constant 0 : index
    %c0_0 = arith.constant 0 : index
    %c0_1 = arith.constant 0 : index
    %0 = vector.load %arg1[%c0, %c0_0, %c0_1] : memref<2x8x32xf32, #tpu.memory_space<vmem>>, vector<2x8x32xf32>
    %1 = vector.shape_cast %0 : vector<2x8x32xf32> to vector<16x32xf32>
    %c0_2 = arith.constant 0 : index
    %c0_3 = arith.constant 0 : index
    %2 = vector.load %arg4[%c0_2, %c0_3] : memref<32x256xf32, #tpu.memory_space<vmem>>, vector<32x256xf32>
    %cst = arith.constant dense<0.000000e+00> : vector<16x256xf32>
    %3 = tpu.matmul %1, %2, %cst {dimension_numbers = #tpu.dot_dimension_numbers<[1], [0], [0], [1], [0, 0, 1, 1], [], []>} : vector<16x32xf32>, vector<32x256xf32>, vector<16x256xf32> -> vector<16x256xf32>
    %c0_4 = arith.constant 0 : index
    %c0_5 = arith.constant 0 : index
    %4 = vector.load %arg5[%c0_4, %c0_5] : memref<1x256xf32, #tpu.memory_space<vmem>>, vector<1x256xf32>
    %5 = vector.broadcast %4 : vector<1x256xf32> to vector<16x256xf32>
    %6 = arith.addf %3, %5 : vector<16x256xf32>
    %c0_6 = arith.constant 0 : index
    %c0_7 = arith.constant 0 : index
    %7 = vector.load %arg6[%c0_6, %c0_7] : memref<32x1xf32, #tpu.memory_space<vmem>>, vector<32x1xf32>
    %cst_8 = arith.constant dense<0.000000e+00> : vector<16x1xf32>
    %8 = tpu.matmul %1, %7, %cst_8 {dimension_numbers = #tpu.dot_dimension_numbers<[1], [0], [0], [1], [0, 0, 1, 1], [], []>} : vector<16x32xf32>, vector<32x1xf32>, vector<16x1xf32> -> vector<16x1xf32>
    %c0_9 = arith.constant 0 : index
    %c0_10 = arith.constant 0 : index
    %9 = vector.load %arg7[%c0_9, %c0_10] : memref<1x1xf32, #tpu.memory_space<vmem>>, vector<1x1xf32>
    %10 = vector.broadcast %9 : vector<1x1xf32> to vector<16x1xf32>
    %11 = arith.addf %8, %10 : vector<16x1xf32>
    %cst_11 = arith.constant 0.000000e+00 : f32
    %12 = vector.broadcast %cst_11 : f32 to vector<16x1xf32>
    %13 = arith.subf %12, %11 : vector<16x1xf32>
    %14 = math.exp %13 : vector<16x1xf32>
    %cst_12 = arith.constant 1.000000e+00 : f32
    %15 = vector.broadcast %cst_12 : f32 to vector<16x1xf32>
    %16 = arith.addf %15, %14 : vector<16x1xf32>
    %cst_13 = arith.constant 1.000000e+00 : f32
    %17 = vector.broadcast %cst_13 : f32 to vector<16x1xf32>
    %18 = arith.divf %17, %16 : vector<16x1xf32>
    %cst_14 = arith.constant 1.000000e+00 : f32
    %19 = vector.broadcast %cst_14 : f32 to vector<16x256xf32>
    %20 = arith.mulf %6, %19 : vector<16x256xf32>
    %cst_15 = arith.constant dense<0xFF800000> : vector<16xf32>
    %21 = vector.multi_reduction <maximumf>, %20, %cst_15 [1] : vector<16x256xf32> to vector<16xf32>
    %22 = vector.shape_cast %21 : vector<16xf32> to vector<16x1xf32>
    %23 = vector.broadcast %22 : vector<16x1xf32> to vector<16x256xf32>
    %24 = arith.subf %20, %23 : vector<16x256xf32>
    %25 = math.exp %24 : vector<16x256xf32>
    %cst_16 = arith.constant dense<0.000000e+00> : vector<16xf32>
    %26 = vector.multi_reduction <add>, %25, %cst_16 [1] : vector<16x256xf32> to vector<16xf32>
    %27 = vector.shape_cast %26 : vector<16xf32> to vector<16x1xf32>
    %28 = tpu.reciprocal %27 {approx = true} : vector<16x1xf32> -> vector<16x1xf32>
    %29 = vector.broadcast %28 : vector<16x1xf32> to vector<16x256xf32>
    %30 = arith.mulf %25, %29 : vector<16x256xf32>
    %31 = vector.broadcast %18 : vector<16x1xf32> to vector<16x256xf32>
    %32 = arith.mulf %31, %30 : vector<16x256xf32>
    %33 = vector.shape_cast %32 : vector<16x256xf32> to vector<2x8x256xf32>
    %c0_17 = arith.constant 0 : index
    %c0_18 = arith.constant 0 : index
    %c0_19 = arith.constant 0 : index
    %34 = vector.load %arg2[%c0_17, %c0_18, %c0_19] : memref<2x8x16xf32, #tpu.memory_space<vmem>>, vector<2x8x16xf32>
    %cst_20 = arith.constant 1.000000e+00 : f32
    %35 = vector.broadcast %cst_20 : f32 to vector<2x8x16xf32>
    %36 = arith.mulf %34, %35 : vector<2x8x16xf32>
    %cst_21 = arith.constant dense<0xFF800000> : vector<2x8xf32>
    %37 = vector.multi_reduction <maximumf>, %36, %cst_21 [2] : vector<2x8x16xf32> to vector<2x8xf32>
    %38 = vector.shape_cast %37 : vector<2x8xf32> to vector<2x8x1xf32>
    %39 = vector.broadcast %38 : vector<2x8x1xf32> to vector<2x8x16xf32>
    %40 = arith.subf %36, %39 : vector<2x8x16xf32>
    %41 = math.exp %40 : vector<2x8x16xf32>
    %cst_22 = arith.constant dense<0.000000e+00> : vector<2x8xf32>
    %42 = vector.multi_reduction <add>, %41, %cst_22 [2] : vector<2x8x16xf32> to vector<2x8xf32>
    %43 = vector.shape_cast %42 : vector<2x8xf32> to vector<2x8x1xf32>
    %44 = tpu.reciprocal %43 {approx = true} : vector<2x8x1xf32> -> vector<2x8x1xf32>
    %45 = vector.broadcast %44 : vector<2x8x1xf32> to vector<2x8x16xf32>
    %46 = arith.mulf %41, %45 : vector<2x8x16xf32>
    %cst_23 = arith.constant 1.000000e+00 : f32
    %47 = vector.broadcast %cst_23 : f32 to vector<16x1xf32>
    %48 = arith.subf %47, %18 : vector<16x1xf32>
    %49 = vector.shape_cast %48 : vector<16x1xf32> to vector<2x8x1xf32>
    %50 = vector.broadcast %49 : vector<2x8x1xf32> to vector<2x8x16xf32>
    %51 = arith.mulf %50, %46 : vector<2x8x16xf32>
    %c0_24 = arith.constant 0 : index
    %c0_25 = arith.constant 0 : index
    %c0_26 = arith.constant 0 : index
    %52 = vector.load %arg3[%c0_24, %c0_25, %c0_26] : memref<2x16x1xi32, #tpu.memory_space<vmem>>, vector<2x16x1xi32>
    %53 = tpu.iota {dimensions = array<i32: 2>} : vector<2x16x256xi32>
    %54 = vector.broadcast %52 : vector<2x16x1xi32> to vector<2x16x256xi32>
    %55 = arith.cmpi eq, %53, %54 : vector<2x16x256xi32>
    %56 = arith.extui %55 : vector<2x16x256xi1> to vector<2x16x256xi32>
    %57 = arith.sitofp %56 : vector<2x16x256xi32> to vector<2x16x256xf32>
    "tpu.trace_start"() <{level = 10 : i32, message = "bts,bsv->btv"}> : () -> ()
    %cst_27 = arith.constant dense<0.000000e+00> : vector<2x8x256xf32>
    %58 = tpu.matmul %51, %57, %cst_27 {dimension_numbers = #tpu.dot_dimension_numbers<[2], [1], [1], [2], [0, 0, 0, 1, 1, 2], [0], [0]>} : vector<2x8x16xf32>, vector<2x16x256xf32>, vector<2x8x256xf32> -> vector<2x8x256xf32>
    "tpu.trace_stop"() : () -> ()
    %59 = arith.addf %33, %58 : vector<2x8x256xf32>
    %c0_28 = arith.constant 0 : index
    %c0_29 = arith.constant 0 : index
    %c0_30 = arith.constant 0 : index
    %60 = vector.load %arg8[%c0_28, %c0_29, %c0_30] : memref<2x8x256xf32, #tpu.memory_space<vmem>>, vector<2x8x256xf32>
    tpu.vector_store %arg8[%c0_28, %c0_29, %c0_30], %59 {strides = array<i32>} : memref<2x8x256xf32, #tpu.memory_space<vmem>>, vector<2x8x256xf32>,
    return
  }
  func.func @transform_0(%arg0: i32) -> (i32, i32, i32) {
    %c0_i32 = arith.constant 0 : i32
    %c0_i32_0 = arith.constant 0 : i32
    %c0_i32_1 = arith.constant 0 : i32
    return %arg0, %c0_i32, %c0_i32_0 : i32, i32, i32
  }
  func.func @transform_1(%arg0: i32) -> (i32, i32, i32) {
    %c0_i32 = arith.constant 0 : i32
    %c0_i32_0 = arith.constant 0 : i32
    %c0_i32_1 = arith.constant 0 : i32
    return %arg0, %c0_i32, %c0_i32_0 : i32, i32, i32
  }
  func.func @transform_2(%arg0: i32) -> (i32, i32, i32) {
    %c0_i32 = arith.constant 0 : i32
    %c0_i32_0 = arith.constant 0 : i32
    %c0_i32_1 = arith.constant 0 : i32
    return %arg0, %c0_i32, %c0_i32_0 : i32, i32, i32
  }
  func.func @transform_3(%arg0: i32) -> (i32, i32) {
    %c0_i32 = arith.constant 0 : i32
    %c0_i32_0 = arith.constant 0 : i32
    %c0_i32_1 = arith.constant 0 : i32
    return %c0_i32, %c0_i32_0 : i32, i32
  }
  func.func @transform_4(%arg0: i32) -> (i32, i32) {
    %c0_i32 = arith.constant 0 : i32
    %c0_i32_0 = arith.constant 0 : i32
    %c0_i32_1 = arith.constant 0 : i32
    return %c0_i32, %c0_i32_0 : i32, i32
  }
  func.func @transform_5(%arg0: i32) -> (i32, i32) {
    %c0_i32 = arith.constant 0 : i32
    %c0_i32_0 = arith.constant 0 : i32
    %c0_i32_1 = arith.constant 0 : i32
    return %c0_i32, %c0_i32_0 : i32, i32
  }
  func.func @transform_6(%arg0: i32) -> (i32, i32) {
    %c0_i32 = arith.constant 0 : i32
    %c0_i32_0 = arith.constant 0 : i32
    %c0_i32_1 = arith.constant 0 : i32
    return %c0_i32, %c0_i32_0 : i32, i32
  }
  func.func @transform_7(%arg0: i32) -> (i32, i32, i32) {
    %c0_i32 = arith.constant 0 : i32
    %c0_i32_0 = arith.constant 0 : i32
    %c0_i32_1 = arith.constant 0 : i32
    return %arg0, %c0_i32, %c0_i32_0 : i32, i32, i32
  }
}

</mosaic_0001>

<bundles_post_ra>
// kernel: tpu_custom_call.1
= control target key start
LH: loop header
LB: loop body
LE: loop exit
PB: predicated region body
PF: predicated region fallthrough
CT: control target
= control target key end

     0   :  { %s834_s0 = inlined_call_operand.hbm [shape: f32[2,8,32], index: 0, kind: input, shape index: {}]   ;;  %s835_s1 = inlined_call_operand.hbm [shape: f32[2,8,16], index: 1, kind: input, shape index: {}]   ;;  %s836_s2 = inlined_call_operand.vmem [shape: s32[2,16,1], index: 2, kind: input, shape index: {}]   ;;  %s837_s3 = inlined_call_operand.vmem [shape: f32[32,256], index: 3, kind: input, shape index: {}]   ;;  %s838_s4 = inlined_call_operand.vmem [shape: f32[1,256], index: 4, kind: input, shape index: {}]   ;;  %s839_s5 = inlined_call_operand.vmem [shape: f32[32,1], index: 5, kind: input, shape index: {}]   ;;  %s840_s6 = inlined_call_operand.<no memory space> [shape: f32[1,1], index: 6, kind: input, shape index: {}]   ;;  %s841_s7 = inlined_call_operand.hbm [shape: f32[2,8,256], index: 7, kind: output, shape index: {}]  }
   0x1   :  { %v12_v0 = vstv %s840_s6 }
   0x2   :  { %13 = vst [vmem:[#allocation2] sm:$0x1] %v12_v0 }
   0x3   :  { %14 = vsyncpa [#allocation4], 0 }
   0x4   :  { %15 = vsyncpa [#allocation7], 0 }
   0x5   :  { %16 = vsyncpa [#allocation5], 0  ;;  %s707_s26 = smov [#allocation3]  }
   0x6   :  { %s22_s27 = sshll.u32 %s707_s26, 4  ;;  %s23_s27 = int_to_ptr.vmem [resolvable:$true] %s22_s27 }
   0x7   :  { %s649_s28 = scalar_lea.vmem %s23_s27, 256  ;;  %p654_p1 = scmp.lt.s32.totalorder %s23_s27, %s23_s27 }
   0x8   :  { %p650_p0 = scmp.ne.s32.totalorder %s23_s27, %s649_s28  ;;  %p655_p2 = scmp.lt.s32.totalorder %s649_s28, %s649_s28 }
   0xa   :  { %p656_p3 = por %p655_p2, %p654_p1 }
   0xc   :  { %p657_p4 = pnand %p656_p3, %p650_p0 }
   0xe   :  { %660 = shalt.err (!%p657_p4)
}
   0xf   :  { %s708_s29 = smov 128   ;;  %s709_s30 = smov 8  }
  0x10   :  { %28 = dma.hbm_to_vmem [thread:$0]  %s834_s0, 256, %s23_s27, [#allocation4], %s708_s29, %s708_s29, %s709_s30  }
  0x11   :  { %s710_s6 = smov [#allocation6]  }
  0x12   :  { %s34_s10 = sshll.u32 %s710_s6, 4  ;;  %s35_s10 = int_to_ptr.vmem [resolvable:$true] %s34_s10 }
  0x13   :  { %s669_s11 = scalar_lea.vmem %s35_s10, 256  ;;  %p674_p6 = scmp.lt.s32.totalorder %s35_s10, %s35_s10 }
  0x14   :  { %p670_p5 = scmp.ne.s32.totalorder %s35_s10, %s669_s11  ;;  %p675_p7 = scmp.lt.s32.totalorder %s669_s11, %s669_s11 }
  0x16   :  { %p676_p8 = por %p675_p7, %p674_p6 }
  0x18   :  { %p677_p9 = pnand %p676_p8, %p670_p5 }
  0x1a   :  { %680 = shalt.err (!%p677_p9)
}
  0x1b   :  { %40 = dma.hbm_to_vmem [thread:$0]  %s835_s1, 256, %s35_s10, [#allocation7], %s708_s29, %s708_s29, %s709_s30  }
  0x1c   :  { %701 = dma.done.wait [#allocation4], 256  }
  0x1d   :  { %702 = vsyncadd [#allocation4], 4294967040 }
  0x1e   :  { %703 = dma.done.wait [#allocation7], 256  }
  0x1f   :  { %704 = vsyncadd [#allocation7], 4294967040  ;;  %v711_v1 = vmov 0.0   ;;  %v712_v2 = vmov 0   ;;  %vm307_vm0 = vcmask 130048   ;;  %v66_v3 = vld [vmem:[%s837_s3 + $0x38] sm:$0xff]  ;;  %v69_v33 = vlaneseq }
  0x20   :  { %150 = vmatprep.mubr.f32.mxu0 %v711_v1  ;;  %612 = vset.pattern.permute.xlu1 %v712_v2  ;;  %v166_v4 = vld [vmem:[%s839_s5 + $0x18] sm:$0xff]  ;;  %v65_v7 = vld [vmem:[%s837_s3 + $0x30] sm:$0xff]  ;;  %v64_v8 = vld [vmem:[%s837_s3 + $0x28] sm:$0xff]  ;;  %vm79_vm1 = vcmask 261120   ;;  %v713_v42 = vmov 1.0  }
  0x21   :  { %611 = vset.pattern.permute.xlu0 %v712_v2  ;;  %v305_v5 = vld [vmem:[#allocation6] sm:$0xff]  ;;  %110 = vmatprep.subr.mxu0 %v66_v3  ;;  %v63_v10 = vld [vmem:[%s837_s3 + $0x20] sm:$0xff]  ;;  %v164_v12 = vld [vmem:[%s839_s5 + $0x8] sm:$0xff]  ;;  %v349_v35 = vand.u32 127, %v69_v33  ;;  %v70_v43 = vshrl.u32 %v69_v33, 7 }
  0x22   :  { %590 = vmatprep.subr.mxu1 %v166_v4  ;;  %v308_v6 = vsel %vm307_vm0, %v305_v5, -inf  ;;  %v165_v9 = vld [vmem:[%s839_s5 + $0x10] sm:$0xff]  ;;  %111 = vmatpush1.msra.mxu0 %v65_v7  ;;  %v62_v11 = vld [vmem:[%s837_s3 + $0x18] sm:$0xff]  ;;  %v60_v16 = vld [vmem:[%s837_s3 + $0x8] sm:$0xff] }
  0x23   :  { %309 = vmax.xlane.f32.xlu0 %v308_v6  ;;  %591 = vmatpush3.msra.mxu1 %v166_v4  ;;  %v306_v13 = vld [vmem:[#allocation6 + $0x8] sm:$0xff]  ;;  %v61_v15 = vld [vmem:[%s837_s3 + $0x10] sm:$0xff]  ;;  %v57_v19 = vld [vmem:[#allocation3] sm:$0xff]  ;;  %v350_v39 = vadd.s32 128, %v349_v35  ;;  %v71_v44 = vsub.s32 0, %v70_v43  ;;  %v75_v46 = vsub.s32 1, %v70_v43 }
  0x24   :  { %112 = vmatprep.subr.mxu0 %v64_v8  ;;  %592 = vmatprep.subr.mxu1 %v165_v9  ;;  %v311_v14 = vsel %vm307_vm0, %v306_v13, -inf  ;;  %v163_v17 = vld [vmem:[%s839_s5] sm:$0xff]  ;;  %v58_v20 = vld [vmem:[#allocation3 + $0x8] sm:$0xff]  ;;  %v347_v21 = vld [vmem:[%s836_s2 + $0x18] sm:$0xff] }
  0x25   :  { %113 = vmatpush1.msra.mxu0 %v63_v10  ;;  %593 = vmatpush3.msra.mxu1 %v165_v9  ;;  %v59_v18 = vld [vmem:[%s837_s3] sm:$0xff]  ;;  %v346_v23 = vld [vmem:[%s836_s2 + $0x10] sm:$0xff]  ;;  %v345_v24 = vld [vmem:[%s836_s2 + $0x8] sm:$0xff] }
  0x26   :  { %114 = vmatprep.subr.mxu0 %v62_v11  ;;  %594 = vmatprep.subr.mxu1 %v164_v12  ;;  %v344_v22 = vld [vmem:[%s836_s2] sm:$0xff] }
  0x27   :  { %312 = vmax.xlane.f32.xlu0 %v311_v14  ;;  %115 = vmatpush1.msra.mxu0 %v61_v15  ;;  %v67_v45 = vld [vmem:[%s838_s4] sm:$0x3]  ;;  %s714_s4 = smov [#allocation8]  }
  0x28   :  { %595 = vmatpush3.msra.mxu1 %v164_v12  ;;  %116 = vmatprep.subr.mxu0 %v60_v16  ;;  %v72_v47 = vrot.slane %v67_v45, %v71_v44  ;;  %v563_v48 = vld [vmem:[#allocation2] ss:$0 sm:$0xff]  ;;  %v76_v52 = vrot.slane %v67_v45, %v75_v46  ;;  %s548_s17 = sshll.u32 %s714_s4, 4  ;;  %s549_s17 = int_to_ptr.vmem [resolvable:$true] %s548_s17 }
  0x29   :  { %596 = vmatprep.subr.mxu1 %v163_v17  ;;  %117 = vmatpush1.msra.mxu0 %v59_v18  ;;  %s681_s18 = scalar_lea.vmem %s549_s17, 512  ;;  %p686_p11 = scmp.lt.s32.totalorder %s549_s17, %s549_s17 }
  0x2a   :  { %597 = vmatpush3.msra.mxu1 %v163_v17  ;;  %598 = vmatprep.mubr.msk.f32.mxu1 %vm79_vm1, %v57_v19  ;;  %p682_p10 = scmp.ne.s32.totalorder %s549_s17, %s681_s18  ;;  %p687_p12 = scmp.lt.s32.totalorder %s681_s18, %s681_s18 }
  0x2b   :  { %561 = vmatmul.mubr.msk.f32.vlgmr.msra.gmra.mxu0 %vm79_vm1, %v57_v19  ;;  %599 = vmatmul.mubr.msk.f32.vlgmr.msra.gmra.mxu1 %vm79_vm1, %v58_v20 }
  0x2c   :  { %156 = vmatprep.mubr.f32.mxu0 %v711_v1  ;;  %361 = vperm.xlu1 %612, %v347_v21   ;;  %p688_p13 = por %p687_p12, %p686_p11 }
  0x2d   :  { %454 = vmatprep.mubr.f32.mxu1 %v711_v1 }
  0x2e   :  { %p689_p0 = pnand %p688_p13, %p682_p10 }
  0x2f   :  { %562 = vmatmul.mubr.msk.f32.gmra.mxu0 %vm79_vm1, %v58_v20 }
  0x30   :  { %528 = vmatprep.mubr.f32.mxu0 %v711_v1  ;;  %352 = vperm.xlu1 %612, %v344_v22  }
  0x34   :  { %358 = vperm.xlu1 %612, %v346_v23  }
  0x3d   :  { %355 = vperm.xlu0 %611, %v345_v24  }
  0xa7   :  { %v362_v31 = vpop.permute.xlu1 %361 }
  0xa8   :  { %vm370_vm2 = vcmp.eq.s32.totalorder %v350_v39, %v362_v31  ;;  %vm369_vm3 = vcmp.eq.s32.totalorder %v349_v35, %v362_v31 }
  0xa9   :  { %579 = vmatprep.subr.msk.mxu0 %vm370_vm2, %v713_v42 }
  0xaa   :  { %580 = vmatpush1.msk.msra.mxu0 %vm369_vm3, %v713_v42 }
  0xab   :  { %v353_v38 = vpop.permute.xlu1 %352 }
  0xac   :  { %v310_v25 = vpop.xlane.xlu0 %309  ;;  %vm364_vm5 = vcmp.eq.s32.totalorder %v350_v39, %v353_v38  ;;  %vm363_vm9 = vcmp.eq.s32.totalorder %v349_v35, %v353_v38 }
  0xad   :  { %v314_v26 = vsub.f32 %v305_v5, %v310_v25 }
  0xaf   :  { %v316_v27 = vmul.f32 1.442695, %v314_v26  ;;  %v359_v40 = vpop.permute.xlu1 %358 }
  0xb0   :  { %v313_v28 = vpop.xlane.xlu0 %312  ;;  %vm368_vm4 = vcmp.eq.s32.totalorder %v350_v39, %v359_v40  ;;  %vm367_vm6 = vcmp.eq.s32.totalorder %v349_v35, %v359_v40 }
  0xb1   :  { %613 = vpow2.f32 %v316_v27  ;;  %v315_v29 = vsub.f32 %v306_v13, %v313_v28  ;;  %581 = vmatprep.subr.msk.mxu0 %vm368_vm4, %v713_v42 }
  0xb2   :  { %582 = vmatpush1.msk.msra.mxu0 %vm367_vm6, %v713_v42 }
  0xb3   :  { %v318_v30 = vmul.f32 1.442695, %v315_v29 }
  0xb5   :  { %615 = vpow2.f32 %v318_v30 }
  0xb8   :  { %v356_v41 = vpop.permute.xlu0 %355 }
  0xb9   :  { %vm365_vm7 = vcmp.eq.s32.totalorder %v349_v35, %v356_v41  ;;  %vm366_vm8 = vcmp.eq.s32.totalorder %v350_v39, %v356_v41 }
  0xba   :  { %574 = vmatprep.subr.msk.mxu1 %vm366_vm8, %v713_v42 }
  0xbb   :  { %575 = vmatpush1.msk.msra.mxu1 %vm365_vm7, %v713_v42 }
  0xbc   :  { %576 = vmatprep.subr.msk.mxu1 %vm364_vm5, %v713_v42 }
  0xbd   :  { %577 = vmatpush1.msk.msra.mxu1 %vm363_vm9, %v713_v42 }
  0xbe   :  { %v816_v32 = vpop.eup %613 }
  0xbf   :  { %v320_v34 = vsel %vm307_vm0, %v816_v32, 0.0 }
  0xc0   :  { %321 = vadd.xlane.f32.xlu1 %v320_v34 }
  0xc2   :  { %v820_v36 = vpop.eup %615 }
  0xc3   :  { %v323_v37 = vsel %vm307_vm0, %v820_v36, 0.0 }
  0xc4   :  { %324 = vadd.xlane.f32.xlu1 %v323_v37 }
  0xeb   :  { %v152_v49 = vpop.f32.mrf.mxu0  ;;  %v600_v51 = vpop.f32.mrf.mxu1 }
  0xec   :  { %v153_v50 = vadd.f32 %v152_v49, %v72_v47  ;;  %v246_v53 = vadd.f32 %v600_v51, %v563_v48 }
  0xed   :  { %v154_v54 = vpop.f32.mrf.mxu0  ;;  %v240_v56 = vpop.f32.mrf.mxu1 }
  0xee   :  { %v155_v55 = vadd.f32 %v154_v54, %v76_v52  ;;  %v250_v57 = vsub.f32 0.0, %v246_v53  ;;  %v241_v58 = vadd.f32 %v563_v48, %v240_v56 }
  0xef   :  { %v158_v59 = vpop.f32.mrf.mxu0 }
  0xf0   :  { %v159_v60 = vadd.f32 %v158_v59, %v72_v47  ;;  %v253_v61 = vmul.f32 1.442695, %v250_v57  ;;  %v249_v62 = vsub.f32 0.0, %v241_v58  ;;  %v261_v11 = vmax.f32 %v153_v50, %v155_v55 }
  0xf1   :  { %v160_v63 = vpop.f32.mrf.mxu0 }
  0xf2   :  { %v161_v0 = vadd.f32 %v160_v63, %v76_v52  ;;  %617 = vpow2.f32 %v253_v61  ;;  %v251_v1 = vmul.f32 1.442695, %v249_v62 }
  0xf4   :  { %v264_v2 = vmax.f32 %v159_v60, %v161_v0  ;;  %619 = vpow2.f32 %v251_v1 }
  0xf6   :  { %265 = vmax.xlane.f32.xlu0 %v264_v2 }
  0xff   :  { %v618_v3 = vpop.eup %617 }
 0x100   :  { %v256_v5 = vadd.f32 1.0, %v618_v3 }
 0x101   :  { %v620_v4 = vpop.eup %619 }
 0x102   :  { %v255_v6 = vadd.f32 1.0, %v620_v4 }
 0x104   :  { %621 = vrcp.f32 %v255_v6 }
 0x105   :  { %623 = vrcp.f32 %v256_v5 }
 0x111   :  { %v622_v7 = vpop.eup %621 }
 0x112   :  { %293 = vperm.xlu0 %611, %v622_v7   ;;  %v330_v8 = vsub.f32 1.0, %v622_v7  ;;  %v624_v9 = vpop.eup %623 }
 0x113   :  { %v331_v10 = vsub.f32 1.0, %v624_v9 }
 0x114   :  { %334 = vperm.xlu1 %612, %v330_v8  }
 0x118   :  { %339 = vperm.xlu1 %612, %v331_v10  }
 0x13c   :  { %262 = vmax.xlane.f32.xlu1 %v261_v11 }
 0x149   :  { %v322_v12 = vpop.xlane.xlu1 %321 }
 0x14a   :  { %625 = vrcp.f32 %v322_v12 }
 0x14d   :  { %v325_v13 = vpop.xlane.xlu1 %324 }
 0x14e   :  { %627 = vrcp.f32 %v325_v13 }
 0x157   :  { %v626_v14 = vpop.eup %625 }
 0x158   :  { %v328_v15 = vmul.f32 %v626_v14, %v816_v32 }
 0x15b   :  { %v628_v16 = vpop.eup %627 }
 0x15c   :  { %v329_v19 = vmul.f32 %v628_v16, %v820_v36 }
 0x17f   :  { %v266_v22 = vpop.xlane.xlu0 %265 }
 0x180   :  { %v269_v23 = vsub.f32 %v159_v60, %v266_v22  ;;  %v270_v24 = vsub.f32 %v161_v0, %v266_v22 }
 0x182   :  { %v275_v28 = vmul.f32 1.442695, %v269_v23  ;;  %v277_v31 = vmul.f32 1.442695, %v270_v24 }
 0x18d   :  { %v294_v44 = vpop.permute.xlu0 %293 }
 0x18f   :  { %v335_v17 = vpop.permute.xlu1 %334 }
 0x190   :  { %v342_v18 = vmul.f32 %v335_v17, %v328_v15 }
 0x192   :  { %578 = vmatmul.mubr.msk.f32.vlgmr.msra.gmra.mxu1 %vm307_vm0, %v342_v18 }
 0x193   :  { %v340_v20 = vpop.permute.xlu1 %339 }
 0x194   :  { %v343_v21 = vmul.f32 %v340_v20, %v329_v19 }
 0x196   :  { %583 = vmatmul.mubr.msk.f32.vlgmr.msra.gmra.mxu0 %vm307_vm0, %v343_v21 }
 0x1c5   :  { %v263_v25 = vpop.xlane.xlu1 %262 }
 0x1c6   :  { %v267_v26 = vsub.f32 %v153_v50, %v263_v25  ;;  %v268_v27 = vsub.f32 %v155_v55, %v263_v25 }
 0x1c8   :  { %v271_v29 = vmul.f32 1.442695, %v267_v26  ;;  %v273_v30 = vmul.f32 1.442695, %v268_v27 }
 0x1ca   :  { %629 = vpow2.f32 %v271_v29 }
 0x1cb   :  { %631 = vpow2.f32 %v273_v30 }
 0x1cc   :  { %633 = vpow2.f32 %v275_v28 }
 0x1cd   :  { %635 = vpow2.f32 %v277_v31 }
 0x1d7   :  { %v630_v32 = vpop.eup %629 }
 0x1d8   :  { %v632_v33 = vpop.eup %631 }
 0x1d9   :  { %v634_v34 = vpop.eup %633  ;;  %v279_v35 = vadd.f32 %v632_v33, %v630_v32 }
 0x1da   :  { %v636_v36 = vpop.eup %635 }
 0x1db   :  { %280 = vadd.xlane.f32.xlu1 %v279_v35  ;;  %v282_v37 = vadd.f32 %v636_v36, %v634_v34 }
 0x1df   :  { %283 = vadd.xlane.f32.xlu1 %v282_v37 }
 0x1f0   :  { %298 = vperm.xlu1 %612, %v624_v9  }
 0x252   :  { %v456_v41 = vpop.f32.mrf.mxu1 }
 0x254   :  { %v458_v48 = vpop.f32.mrf.mxu1 }
 0x256   :  { %v530_v49 = vpop.f32.mrf.mxu0 }
 0x258   :  { %v532_v57 = vpop.f32.mrf.mxu0 }
 0x264   :  { %v281_v38 = vpop.xlane.xlu1 %280 }
 0x265   :  { %637 = vrcp.f32 %v281_v38 }
 0x268   :  { %v284_v39 = vpop.xlane.xlu1 %283 }
 0x269   :  { %639 = vrcp.f32 %v284_v39 }
 0x26c   :  { %v299_v54 = vpop.permute.xlu1 %298 }
 0x272   :  { %v638_v40 = vpop.eup %637 }
 0x273   :  { %v287_v42 = vmul.f32 %v638_v40, %v630_v32  ;;  %v288_v43 = vmul.f32 %v638_v40, %v632_v33 }
 0x275   :  { %v301_v45 = vmul.f32 %v294_v44, %v287_v42  ;;  %v302_v46 = vmul.f32 %v294_v44, %v288_v43 }
 0x276   :  { %v640_v47 = vpop.eup %639 }
 0x277   :  { %v289_v50 = vmul.f32 %v640_v47, %v634_v34  ;;  %v290_v51 = vmul.f32 %v640_v47, %v636_v36  ;;  %v535_v52 = vadd.f32 %v456_v41, %v301_v45  ;;  %v536_v53 = vadd.f32 %v458_v48, %v302_v46 }
 0x279   :  { %v303_v55 = vmul.f32 %v299_v54, %v289_v50  ;;  %v304_v56 = vmul.f32 %v299_v54, %v290_v51  ;;  %539 = vst [vmem:[#allocation8] sm:$0xff] %v535_v52  ;;  %540 = vst [vmem:[#allocation8 + $0x8] sm:$0xff] %v536_v53 }
 0x27b   :  { %v537_v58 = vadd.f32 %v530_v49, %v303_v55  ;;  %v538_v59 = vadd.f32 %v532_v57, %v304_v56 }
 0x27d   :  { %541 = vst [vmem:[#allocation8 + $0x10] sm:$0xff] %v537_v58  ;;  %542 = vst [vmem:[#allocation8 + $0x18] sm:$0xff] %v538_v59 }
 0x27e   :  { %692 = shalt.err (!%p689_p0)
}
 0x27f   :  { %s715_s19 = smov 256   ;;  %s716_s20 = smov 16  }
 0x280   :  { %554 = dma.vmem_to_hbm [thread:$0]  %s549_s17, 512, %s841_s7, [#allocation5], %s715_s19, %s715_s19, %s716_s20  }
 0x281   :  { %705 = dma.done.wait [#allocation5], 512  }
 0x282   :  { %706 = vsyncadd [#allocation5], 4294966784 }
 0x283   :  { %558 = vsyncpa [#allocation4], 1 }
 0x284   :  { %559 = vsyncpa [#allocation7], 1 }
 0x285   :  { %560 = vsyncpa [#allocation5], 1 }

</bundles_post_ra>
